<compile_context>
chip_gen: v6e
topology: v6e:2x2x1
jax: 0.10.0
libtpu: 0.0.40
codegen_flags: <defaults>
</compile_context>

<pallas_src>
import jax
import jax.numpy as jnp
from jax.experimental import pallas as pl
from jax.experimental.pallas import tpu as pltpu

DIM_EMB = 32
NUM_HEAD = 4
HEAD_DIM = DIM_EMB // NUM_HEAD
LN_EPS = 1e-5
NEG_INF = -1e30

# batch-block cap: ~256 elements * ~30 KiB live f32 temporaries ~= 8 MiB, which fits under
# v5e's 16 MiB scoped-VMEM default and well under v6e/v7x's 32 MiB default (v7x has only
# 64 MiB physical VMEM, so do NOT size this against the 128 MiB v5e/v6e intuition).
# Users on v6e/v7x can pass block_batch=512 explicitly if compile time / VMEM allow.
_BB_CAP = 256


def _log2_exact(n):
    s = n.bit_length() - 1
    assert (1 << s) == n, f"{n} must be a power of two for the shift-based head masks"
    return s


# ---------------------------------------------------------------------------
# Pallas kernel: BB batch elements per grid step.
#   wqkv_ref : (3E, 3E) block-diag [WqT, WkT, WvT]   (so [q|k|v] @ wqkv = [Q|K|V])
#   wmats_ref: (3, E, E) pre-transposed [WoT, W1T, W2T]
#   bqkv_ref : (1, 3E)   [bq | bk | bv]
#   vecs_ref : (7, E)    [bo, ln1w, ln1b, b1, b2, ln2w, ln2b]
# ---------------------------------------------------------------------------
def sakt_block_kernel(q_ref, k_ref, v_ref, wqkv_ref, wmats_ref, bqkv_ref, vecs_ref,
                      out_ref):
    BB, S, E = q_ref.shape
    H, HD = NUM_HEAD, HEAD_DIM
    HS = H * S
    N = BB * S
    f32 = jnp.float32
    s_shift = _log2_exact(S)
    hd_shift = _log2_exact(HD)

    # load + upcast to f32 (all elementwise / softmax / LN math stays f32; I/O may be bf16)
    q = q_ref[...].astype(f32).reshape(N, E)
    k = k_ref[...].astype(f32).reshape(N, E)
    v = v_ref[...].astype(f32).reshape(N, E)

    # ---- fused QKV projection: one (N, 3E) @ (3E, 3E) matmul --------------------------
    x_cat = jnp.concatenate([q, k, v], axis=-1)                       # (N, 96)
    qkv = jnp.dot(x_cat, wqkv_ref[...], preferred_element_type=f32) + bqkv_ref[0]
    Q3 = qkv[:, :E].reshape(BB, S, E)
    K3 = qkv[:, E:2 * E].reshape(BB, S, E)
    V3 = qkv[:, 2 * E:].reshape(BB, S, E)

    # ---- head-expanded (block-diagonal over heads) K and V: (BB, H*S, E) --------------
    # head_sel[r, c] = 1 iff column c belongs to the head of row-block r
    head_row = jax.lax.broadcasted_iota(jnp.int32, (HS, E), 0) >> s_shift
    head_col = jax.lax.broadcasted_iota(jnp.int32, (HS, E), 1) >> hd_shift
    head_sel = (head_row == head_col).astype(f32)                     # (HS, E)
    bdK = jnp.tile(K3, (1, H, 1)) * head_sel                          # (BB, HS, E)
    bdV = jnp.tile(V3, (1, H, 1)) * head_sel                          # (BB, HS, E)

    # ---- scores: one (S,E)@(E,HS) matmul per batch element -> (BB, S, HS) -------------
    # scores[b, i, h*S + j] = Q_h[b,i,:] . K_h[b,j,:]   (head selection baked into bdK)
    scale = f32(1.0 / (HD ** 0.5))
    s_bhd = jnp.einsum("bic,bsc->bis", Q3, bdK, preferred_element_type=f32) * scale

    # causal mask inside each head's S-wide column group (j > i masked)
    row_i = jax.lax.broadcasted_iota(jnp.int32, (S, HS), 0)
    col_j = jax.lax.broadcasted_iota(jnp.int32, (S, HS), 1) & (S - 1)
    causal_add = jnp.where(col_j > row_i, f32(NEG_INF), f32(0.0))     # (S, HS)
    s_bhd = s_bhd + causal_add

    # grouped softmax: a shared per-row max is valid for every head group (any per-group
    # constant cancels); masked entries underflow to exactly 0.
    m = jnp.max(s_bhd, axis=-1, keepdims=True)
    p = jnp.exp(s_bhd - m)                                            # (BB, S, HS)

    # per-head denominators broadcast back onto their 8-lane groups via one flat
    # (N, HS) @ (HS, HS) matmul against a constant ones-block matrix (single RHS load).
    grp_a = jax.lax.broadcasted_iota(jnp.int32, (HS, HS), 0) >> s_shift
    grp_b = jax.lax.broadcasted_iota(jnp.int32, (HS, HS), 1) >> s_shift
    G = (grp_a == grp_b).astype(f32)                                  # (HS, HS)
    denom = jnp.dot(p.reshape(N, HS), G, preferred_element_type=f32).reshape(BB, S, HS)
    denom = jnp.maximum(denom, f32(1e-30))                            # guard (no-op normally)
    attn = p * pl.reciprocal(denom, approx=True)                      # EUP slot, ~free

    # ---- PV: one (S,HS)@(HS,E) matmul per batch element; head routing baked into bdV --
    ctx = jnp.einsum("bis,bsc->bic", attn, bdV,
                     preferred_element_type=f32).reshape(N, E)

    # ---- output projection, residual + LN, FFN, residual + LN -------------------------
    wo_t, w1_t, w2_t = wmats_ref[0], wmats_ref[1], wmats_ref[2]
    bo = vecs_ref[0]
    ln1w, ln1b = vecs_ref[1], vecs_ref[2]
    b1, b2 = vecs_ref[3], vecs_ref[4]
    ln2w, ln2b = vecs_ref[5], vecs_ref[6]

    attn_out = jnp.dot(ctx, wo_t, preferred_element_type=f32) + bo

    def layer_norm(x, w, b):
        mu = jnp.mean(x, axis=-1, keepdims=True)
        var = jnp.mean((x - mu) ** 2, axis=-1, keepdims=True)
        return (x - mu) * jax.lax.rsqrt(var + LN_EPS) * w + b

    x1 = layer_norm(q + attn_out, ln1w, ln1b)

    # FFN: Linear -> ReLU -> (Dropout = identity) -> Linear
    h1 = jnp.maximum(jnp.dot(x1, w1_t, preferred_element_type=f32) + b1, 0.0)
    h2 = jnp.dot(h1, w2_t, preferred_element_type=f32) + b2

    out = layer_norm(x1 + h2, ln2w, ln2b)
    # TODO(synk): if profiling shows masked 32-lane vst/writeback as the binding slot,
    # present the output lane-dense as (bb, S*E) instead.
    out_ref[...] = out.reshape(BB, S, E).astype(out_ref.dtype)


# ---------------------------------------------------------------------------
# Wrapper: grid over batch blocks of bb elements (B padded up); weights packed.
# ---------------------------------------------------------------------------
def _pick_block_batch(B):
    if B <= 1:
        return max(B, 1)
    # keep at least 2 grid steps so both v7x TensorCores get a block (dimension "parallel")
    return max(1, min(_BB_CAP, pl.cdiv(B, 2)))


def blocks_forward(q, k, v, kparams, block_batch=None):
    B, S, E = q.shape
    assert E == DIM_EMB and k.shape == q.shape and v.shape == q.shape

    bb = _pick_block_batch(B) if block_batch is None else max(1, min(block_batch, B))
    steps = pl.cdiv(B, bb)
    B_pad = steps * bb
    if B_pad != B:
        pad = ((0, B_pad - B), (0, 0), (0, 0))
        q = jnp.pad(q, pad)
        k = jnp.pad(k, pad)
        v = jnp.pad(v, pad)

    wqkv = kparams["wqkv"]     # (3E, 3E)
    wmats = kparams["wmats"]   # (3, E, E)
    bqkv = kparams["bqkv"]     # (1, 3E)
    vecs = kparams["vecs"]     # (7, E)

    qkv_spec = pl.BlockSpec((bb, S, E), lambda i: (i, 0, 0))
    out = pl.pallas_call(
        sakt_block_kernel,
        out_shape=jax.ShapeDtypeStruct((B_pad, S, E), q.dtype),
        grid_spec=pltpu.PrefetchScalarGridSpec(
            num_scalar_prefetch=0,
            grid=(steps,),
            in_specs=[qkv_spec, qkv_spec, qkv_spec,
                      pl.BlockSpec(wqkv.shape, lambda i: (0, 0)),
                      pl.BlockSpec(wmats.shape, lambda i: (0, 0, 0)),
                      pl.BlockSpec(bqkv.shape, lambda i: (0, 0)),
                      pl.BlockSpec(vecs.shape, lambda i: (0, 0))],
            out_specs=pl.BlockSpec((bb, S, E), lambda i: (i, 0, 0))),
        compiler_params=pltpu.CompilerParams(
            dimension_semantics=("parallel",),
            vmem_limit_bytes=32 * 1024 * 1024),
    )(q, k, v, wqkv, wmats, bqkv, vecs)
    return out[:B] if B_pad != B else out


# ---------------------------------------------------------------------------
# Deterministic parameter init (shapes follow the PyTorch module __init__).
# ---------------------------------------------------------------------------
def init_params(key):
    E = DIM_EMB
    ks = jax.random.split(key, 12)
    return {
        "in_proj_w": 0.05 * jax.random.normal(ks[0], (3 * E, E), jnp.float32),
        "in_proj_b": 0.01 * jax.random.normal(ks[1], (3 * E,), jnp.float32),
        "out_w":     0.05 * jax.random.normal(ks[2], (E, E), jnp.float32),
        "out_b":     0.01 * jax.random.normal(ks[3], (E,), jnp.float32),
        "ln1_w": 1.0 + 0.01 * jax.random.normal(ks[4], (E,), jnp.float32),
        "ln1_b": 0.01 * jax.random.normal(ks[5], (E,), jnp.float32),
        "ffn_w1": 0.05 * jax.random.normal(ks[6], (E, E), jnp.float32),
        "ffn_b1": 0.01 * jax.random.normal(ks[7], (E,), jnp.float32),
        "ffn_w2": 0.05 * jax.random.normal(ks[8], (E, E), jnp.float32),
        "ffn_b2": 0.01 * jax.random.normal(ks[9], (E,), jnp.float32),
        "ln2_w": 1.0 + 0.01 * jax.random.normal(ks[10], (E,), jnp.float32),
        "ln2_b": 0.01 * jax.random.normal(ks[11], (E,), jnp.float32),
    }


def prepare_kernel_params(p):
    """Pack all weights host-side; pre-transpose every matrix; block-diag the QKV weight."""
    E = DIM_EMB
    W, b = p["in_proj_w"], p["in_proj_b"]
    z = jnp.zeros((E, E), jnp.float32)
    wqkv = jnp.block([
        [W[:E].T,       z,              z],
        [z,             W[E:2 * E].T,   z],
        [z,             z,              W[2 * E:].T],
    ])                                                    # (3E, 3E)
    bqkv = b.reshape(1, 3 * E)                            # (1, 3E)
    wmats = jnp.stack([p["out_w"].T, p["ffn_w1"].T, p["ffn_w2"].T], axis=0)   # (3, E, E)
    vecs = jnp.stack([p["out_b"],
                      p["ln1_w"], p["ln1_b"],
                      p["ffn_b1"], p["ffn_b2"],
                      p["ln2_w"], p["ln2_b"]], axis=0)    # (7, E)
    return {"wqkv": wqkv, "bqkv": bqkv, "wmats": wmats, "vecs": vecs}


# ---------------------------------------------------------------------------
# Pure-JAX reference (mirrors nn.MultiheadAttention + residual/LN + FFN).
# ---------------------------------------------------------------------------
def ref_forward(q, k, v, p):
    B, S, E = q.shape
    H, hd = NUM_HEAD, HEAD_DIM
    W, bias = p["in_proj_w"], p["in_proj_b"]
    Q = q @ W[:E].T + bias[:E]
    K = k @ W[E:2 * E].T + bias[E:2 * E]
    V = v @ W[2 * E:].T + bias[2 * E:]

    def split(x):
        return x.reshape(B, S, H, hd).transpose(0, 2, 1, 3)

    Qh, Kh, Vh = split(Q), split(K), split(V)
    s = jnp.einsum("bhqd,bhkd->bhqk", Qh, Kh) / (hd ** 0.5)
    mask = jnp.triu(jnp.ones((S, S), bool), 1)
    s = jnp.where(mask, NEG_INF, s)
    attn = jax.nn.softmax(s, axis=-1)
    ctx = jnp.einsum("bhqk,bhkd->bhqd", attn, Vh).transpose(0, 2, 1, 3).reshape(B, S, E)
    attn_out = ctx @ p["out_w"].T + p["out_b"]

    def ln(x, w, b):
        mu = x.mean(-1, keepdims=True)
        var = ((x - mu) ** 2).mean(-1, keepdims=True)
        return (x - mu) / jnp.sqrt(var + LN_EPS) * w + b

    x1 = ln(q + attn_out, p["ln1_w"], p["ln1_b"])
    h1 = jnp.maximum(x1 @ p["ffn_w1"].T + p["ffn_b1"], 0.0)
    h2 = h1 @ p["ffn_w2"].T + p["ffn_b2"]
    return ln(x1 + h2, p["ln2_w"], p["ln2_b"])


if __name__ == "__main__":
    key = jax.random.PRNGKey(0)
    kdata, kp = jax.random.split(key, 2)

    params = init_params(kp)
    kparams = prepare_kernel_params(params)

    # (2, 8, f32): bb=1, 2 grid steps.
    # (13, 8, f32): bb=7, pad to 14 -> exercises batch padding + the folded-head path.
    # (64, 8, bf16): bb=32 -> exercises bf16 HBM I/O with f32 in-kernel math.
    configs = [
        (2, 8, jnp.float32, 3e-3),
        (13, 8, jnp.float32, 3e-3),
        (64, 8, jnp.bfloat16, 6e-2),
    ]
    for B, S, dtype, tol in configs:
        kq, kk, kv = jax.random.split(jax.random.fold_in(kdata, B), 3)
        q = jax.random.normal(kq, (B, S, DIM_EMB), jnp.float32).astype(dtype)
        k = jax.random.normal(kk, (B, S, DIM_EMB), jnp.float32).astype(dtype)
        v = jax.random.normal(kv, (B, S, DIM_EMB), jnp.float32).astype(dtype)

        out = jax.block_until_ready(blocks_forward(q, k, v, kparams))
        ref = ref_forward(q.astype(jnp.float32), k.astype(jnp.float32),
                          v.astype(jnp.float32), params)
        err = float(jnp.max(jnp.abs(out.astype(jnp.float32) - ref)))
        # f32 tolerance loosened slightly vs exact math (EUP approximate reciprocal in
        # the softmax); bf16 tolerance covers the output-dtype rounding.
        assert err < tol, f"B={B} dtype={dtype}: max abs err {err}"

    print("KERNEL_OK")
</pallas_src>

<mosaic_0001>
module attributes {stable_mosaic.version = 11 : i64} {
  func.func @sakt_block_kernel(%arg0: i32, %arg1: memref<1x8x32xf32, #tpu.memory_space<vmem>>, %arg2: memref<1x8x32xf32, #tpu.memory_space<vmem>>, %arg3: memref<1x8x32xf32, #tpu.memory_space<vmem>>, %arg4: memref<96x96xf32, #tpu.memory_space<vmem>>, %arg5: memref<3x32x32xf32, #tpu.memory_space<vmem>>, %arg6: memref<1x96xf32, #tpu.memory_space<vmem>>, %arg7: memref<7x32xf32, #tpu.memory_space<vmem>>, %arg8: memref<1x8x32xf32, #tpu.memory_space<vmem>>) attributes {dimension_semantics = [#tpu.dimension_semantics<parallel>], iteration_bounds = array<i64: 2>, scalar_prefetch = 0 : i64, scratch_operands = 0 : i64, tpu.core_type = #tpu.core_type<tc>, window_params = [{transform_indices = @transform_0, window_bounds = array<i64: 1, 8, 32>}, {transform_indices = @transform_1, window_bounds = array<i64: 1, 8, 32>}, {transform_indices = @transform_2, window_bounds = array<i64: 1, 8, 32>}, {pipeline_mode = #tpu.pipeline_mode<synchronous>, transform_indices = @transform_3, window_bounds = array<i64: 96, 96>}, {pipeline_mode = #tpu.pipeline_mode<synchronous>, transform_indices = @transform_4, window_bounds = array<i64: 3, 32, 32>}, {pipeline_mode = #tpu.pipeline_mode<synchronous>, transform_indices = @transform_5, window_bounds = array<i64: 1, 96>}, {pipeline_mode = #tpu.pipeline_mode<synchronous>, transform_indices = @transform_6, window_bounds = array<i64: 7, 32>}, {transform_indices = @transform_7, window_bounds = array<i64: 1, 8, 32>}]} {
    %c0 = arith.constant 0 : index
    %c0_0 = arith.constant 0 : index
    %c0_1 = arith.constant 0 : index
    %0 = vector.load %arg1[%c0, %c0_0, %c0_1] : memref<1x8x32xf32, #tpu.memory_space<vmem>>, vector<1x8x32xf32>
    %1 = vector.shape_cast %0 : vector<1x8x32xf32> to vector<8x32xf32>
    %c0_2 = arith.constant 0 : index
    %c0_3 = arith.constant 0 : index
    %c0_4 = arith.constant 0 : index
    %2 = vector.load %arg2[%c0_2, %c0_3, %c0_4] : memref<1x8x32xf32, #tpu.memory_space<vmem>>, vector<1x8x32xf32>
    %3 = vector.shape_cast %2 : vector<1x8x32xf32> to vector<8x32xf32>
    %c0_5 = arith.constant 0 : index
    %c0_6 = arith.constant 0 : index
    %c0_7 = arith.constant 0 : index
    %4 = vector.load %arg3[%c0_5, %c0_6, %c0_7] : memref<1x8x32xf32, #tpu.memory_space<vmem>>, vector<1x8x32xf32>
    %5 = vector.shape_cast %4 : vector<1x8x32xf32> to vector<8x32xf32>
    %6 = tpu.concatenate %1, %3, %5 in 1 : vector<8x32xf32>, vector<8x32xf32>, vector<8x32xf32> -> vector<8x96xf32>
    %c0_8 = arith.constant 0 : index
    %c0_9 = arith.constant 0 : index
    %7 = vector.load %arg4[%c0_8, %c0_9] : memref<96x96xf32, #tpu.memory_space<vmem>>, vector<96x96xf32>
    %cst = arith.constant dense<0.000000e+00> : vector<8x96xf32>
    %8 = tpu.matmul %6, %7, %cst {dimension_numbers = #tpu.dot_dimension_numbers<[1], [0], [0], [1], [0, 0, 1, 1], [], []>} : vector<8x96xf32>, vector<96x96xf32>, vector<8x96xf32> -> vector<8x96xf32>
    %c0_10 = arith.constant 0 : index
    %c0_11 = arith.constant 0 : index
    %9 = vector.load %arg6[%c0_10, %c0_11] : memref<1x96xf32, #tpu.memory_space<vmem>>, vector<1x96xf32>
    %10 = vector.shape_cast %9 : vector<1x96xf32> to vector<96xf32>
    %11 = vector.shape_cast %10 : vector<96xf32> to vector<1x96xf32>
    %12 = vector.broadcast %11 : vector<1x96xf32> to vector<8x96xf32>
    %13 = arith.addf %8, %12 : vector<8x96xf32>
    %14 = vector.extract_strided_slice %13 {offsets = [0, 0], sizes = [8, 32], strides = [1, 1]} : vector<8x96xf32> to vector<8x32xf32>
    %15 = vector.shape_cast %14 : vector<8x32xf32> to vector<1x8x32xf32>
    %16 = vector.extract_strided_slice %13 {offsets = [0, 32], sizes = [8, 32], strides = [1, 1]} : vector<8x96xf32> to vector<8x32xf32>
    %17 = vector.shape_cast %16 : vector<8x32xf32> to vector<1x8x32xf32>
    %18 = vector.extract_strided_slice %13 {offsets = [0, 64], sizes = [8, 32], strides = [1, 1]} : vector<8x96xf32> to vector<8x32xf32>
    %19 = vector.shape_cast %18 : vector<8x32xf32> to vector<1x8x32xf32>
    %20 = tpu.iota {dimensions = array<i32: 0>} : vector<32x32xi32>
    %c3_i32 = arith.constant 3 : i32
    %21 = vector.broadcast %c3_i32 : i32 to vector<32x32xi32>
    %22 = arith.shrsi %20, %21 : vector<32x32xi32>
    %23 = tpu.iota {dimensions = array<i32: 1>} : vector<32x32xi32>
    %c3_i32_12 = arith.constant 3 : i32
    %24 = vector.broadcast %c3_i32_12 : i32 to vector<32x32xi32>
    %25 = arith.shrsi %23, %24 : vector<32x32xi32>
    %26 = arith.cmpi eq, %22, %25 : vector<32x32xi32>
    %27 = arith.extui %26 : vector<32x32xi1> to vector<32x32xi32>
    %28 = arith.sitofp %27 : vector<32x32xi32> to vector<32x32xf32>
    %29 = tpu.concatenate %17, %17, %17, %17 in 1 : vector<1x8x32xf32>, vector<1x8x32xf32>, vector<1x8x32xf32>, vector<1x8x32xf32> -> vector<1x32x32xf32>
    %30 = vector.shape_cast %28 : vector<32x32xf32> to vector<1x32x32xf32>
    %31 = arith.mulf %29, %30 : vector<1x32x32xf32>
    %32 = tpu.concatenate %19, %19, %19, %19 in 1 : vector<1x8x32xf32>, vector<1x8x32xf32>, vector<1x8x32xf32>, vector<1x8x32xf32> -> vector<1x32x32xf32>
    %33 = vector.shape_cast %28 : vector<32x32xf32> to vector<1x32x32xf32>
    %34 = arith.mulf %32, %33 : vector<1x32x32xf32>
    "tpu.trace_start"() <{level = 10 : i32, message = "bic,bsc->bis"}> : () -> ()
    %cst_13 = arith.constant dense<0.000000e+00> : vector<1x8x32xf32>
    %35 = tpu.matmul %15, %31, %cst_13 {dimension_numbers = #tpu.dot_dimension_numbers<[2], [2], [1], [1], [0, 0, 0, 1, 1, 1], [0], [0]>} : vector<1x8x32xf32>, vector<1x32x32xf32>, vector<1x8x32xf32> -> vector<1x8x32xf32>
    "tpu.trace_stop"() : () -> ()
    %cst_14 = arith.constant 0.353553385 : f32
    %36 = vector.broadcast %cst_14 : f32 to vector<1x8x32xf32>
    %37 = arith.mulf %35, %36 : vector<1x8x32xf32>
    %38 = tpu.iota {dimensions = array<i32: 0>} : vector<8x32xi32>
    %39 = tpu.iota {dimensions = array<i32: 1>} : vector<8x32xi32>
    %c7_i32 = arith.constant 7 : i32
    %40 = vector.broadcast %c7_i32 : i32 to vector<8x32xi32>
    %41 = arith.andi %39, %40 : vector<8x32xi32>
    %42 = arith.cmpi sgt, %41, %38 : vector<8x32xi32>
    %cst_15 = arith.constant -1.000000e+30 : f32
    %cst_16 = arith.constant 0.000000e+00 : f32
    %43 = vector.broadcast %cst_15 : f32 to vector<8x32xf32>
    %44 = vector.broadcast %cst_16 : f32 to vector<8x32xf32>
    %45 = arith.select %42, %43, %44 : vector<8x32xi1>, vector<8x32xf32>
    %46 = vector.shape_cast %45 : vector<8x32xf32> to vector<1x8x32xf32>
    %47 = arith.addf %37, %46 : vector<1x8x32xf32>
    %cst_17 = arith.constant dense<0xFF800000> : vector<1x8xf32>
    %48 = vector.multi_reduction <maximumf>, %47, %cst_17 [2] : vector<1x8x32xf32> to vector<1x8xf32>
    %49 = vector.shape_cast %48 : vector<1x8xf32> to vector<1x8x1xf32>
    %50 = vector.broadcast %49 : vector<1x8x1xf32> to vector<1x8x32xf32>
    %51 = arith.subf %47, %50 : vector<1x8x32xf32>
    %52 = math.exp %51 : vector<1x8x32xf32>
    %53 = tpu.iota {dimensions = array<i32: 0>} : vector<32x32xi32>
    %c3_i32_18 = arith.constant 3 : i32
    %54 = vector.broadcast %c3_i32_18 : i32 to vector<32x32xi32>
    %55 = arith.shrsi %53, %54 : vector<32x32xi32>
    %56 = tpu.iota {dimensions = array<i32: 1>} : vector<32x32xi32>
    %c3_i32_19 = arith.constant 3 : i32
    %57 = vector.broadcast %c3_i32_19 : i32 to vector<32x32xi32>
    %58 = arith.shrsi %56, %57 : vector<32x32xi32>
    %59 = arith.cmpi eq, %55, %58 : vector<32x32xi32>
    %60 = arith.extui %59 : vector<32x32xi1> to vector<32x32xi32>
    %61 = arith.sitofp %60 : vector<32x32xi32> to vector<32x32xf32>
    %62 = vector.shape_cast %52 : vector<1x8x32xf32> to vector<8x32xf32>
    %cst_20 = arith.constant dense<0.000000e+00> : vector<8x32xf32>
    %63 = tpu.matmul %62, %61, %cst_20 {dimension_numbers = #tpu.dot_dimension_numbers<[1], [0], [0], [1], [0, 0, 1, 1], [], []>} : vector<8x32xf32>, vector<32x32xf32>, vector<8x32xf32> -> vector<8x32xf32>
    %64 = vector.shape_cast %63 : vector<8x32xf32> to vector<1x8x32xf32>
    %cst_21 = arith.constant 1.000000e-30 : f32
    %65 = vector.broadcast %cst_21 : f32 to vector<1x8x32xf32>
    %66 = arith.maximumf %64, %65 : vector<1x8x32xf32>
    %67 = tpu.reciprocal %66 {approx = true} : vector<1x8x32xf32> -> vector<1x8x32xf32>
    %68 = arith.mulf %52, %67 : vector<1x8x32xf32>
    "tpu.trace_start"() <{level = 10 : i32, message = "bis,bsc->bic"}> : () -> ()
    %cst_22 = arith.constant dense<0.000000e+00> : vector<1x8x32xf32>
    %69 = tpu.matmul %68, %34, %cst_22 {dimension_numbers = #tpu.dot_dimension_numbers<[2], [1], [1], [2], [0, 0, 0, 1, 1, 2], [0], [0]>} : vector<1x8x32xf32>, vector<1x32x32xf32>, vector<1x8x32xf32> -> vector<1x8x32xf32>
    "tpu.trace_stop"() : () -> ()
    %70 = vector.shape_cast %69 : vector<1x8x32xf32> to vector<8x32xf32>
    %c0_23 = arith.constant 0 : index
    %c0_24 = arith.constant 0 : index
    %c0_25 = arith.constant 0 : index
    %71 = vector.load %arg5[%c0_23, %c0_24, %c0_25] : memref<3x32x32xf32, #tpu.memory_space<vmem>>, vector<1x32x32xf32>
    %72 = vector.shape_cast %71 : vector<1x32x32xf32> to vector<32x32xf32>
    %c1 = arith.constant 1 : index
    %c0_26 = arith.constant 0 : index
    %c0_27 = arith.constant 0 : index
    %73 = vector.load %arg5[%c1, %c0_26, %c0_27] : memref<3x32x32xf32, #tpu.memory_space<vmem>>, vector<1x32x32xf32>
    %74 = vector.shape_cast %73 : vector<1x32x32xf32> to vector<32x32xf32>
    %c2 = arith.constant 2 : index
    %c0_28 = arith.constant 0 : index
    %c0_29 = arith.constant 0 : index
    %75 = vector.load %arg5[%c2, %c0_28, %c0_29] : memref<3x32x32xf32, #tpu.memory_space<vmem>>, vector<1x32x32xf32>
    %76 = vector.shape_cast %75 : vector<1x32x32xf32> to vector<32x32xf32>
    %c0_30 = arith.constant 0 : index
    %c0_31 = arith.constant 0 : index
    %77 = vector.load %arg7[%c0_30, %c0_31] : memref<7x32xf32, #tpu.memory_space<vmem>>, vector<1x32xf32>
    %78 = vector.shape_cast %77 : vector<1x32xf32> to vector<32xf32>
    %c1_32 = arith.constant 1 : index
    %c0_33 = arith.constant 0 : index
    %79 = vector.load %arg7[%c1_32, %c0_33] : memref<7x32xf32, #tpu.memory_space<vmem>>, vector<1x32xf32>
    %80 = vector.shape_cast %79 : vector<1x32xf32> to vector<32xf32>
    %c2_34 = arith.constant 2 : index
    %c0_35 = arith.constant 0 : index
    %81 = vector.load %arg7[%c2_34, %c0_35] : memref<7x32xf32, #tpu.memory_space<vmem>>, vector<1x32xf32>
    %82 = vector.shape_cast %81 : vector<1x32xf32> to vector<32xf32>
    %c3 = arith.constant 3 : index
    %c0_36 = arith.constant 0 : index
    %83 = vector.load %arg7[%c3, %c0_36] : memref<7x32xf32, #tpu.memory_space<vmem>>, vector<1x32xf32>
    %84 = vector.shape_cast %83 : vector<1x32xf32> to vector<32xf32>
    %c4 = arith.constant 4 : index
    %c0_37 = arith.constant 0 : index
    %85 = vector.load %arg7[%c4, %c0_37] : memref<7x32xf32, #tpu.memory_space<vmem>>, vector<1x32xf32>
    %86 = vector.shape_cast %85 : vector<1x32xf32> to vector<32xf32>
    %c5 = arith.constant 5 : index
    %c0_38 = arith.constant 0 : index
    %87 = vector.load %arg7[%c5, %c0_38] : memref<7x32xf32, #tpu.memory_space<vmem>>, vector<1x32xf32>
    %88 = vector.shape_cast %87 : vector<1x32xf32> to vector<32xf32>
    %c6 = arith.constant 6 : index
    %c0_39 = arith.constant 0 : index
    %89 = vector.load %arg7[%c6, %c0_39] : memref<7x32xf32, #tpu.memory_space<vmem>>, vector<1x32xf32>
    %90 = vector.shape_cast %89 : vector<1x32xf32> to vector<32xf32>
    %cst_40 = arith.constant dense<0.000000e+00> : vector<8x32xf32>
    %91 = tpu.matmul %70, %72, %cst_40 {dimension_numbers = #tpu.dot_dimension_numbers<[1], [0], [0], [1], [0, 0, 1, 1], [], []>} : vector<8x32xf32>, vector<32x32xf32>, vector<8x32xf32> -> vector<8x32xf32>
    %92 = vector.shape_cast %78 : vector<32xf32> to vector<1x32xf32>
    %93 = vector.broadcast %92 : vector<1x32xf32> to vector<8x32xf32>
    %94 = arith.addf %91, %93 : vector<8x32xf32>
    %95 = arith.addf %1, %94 : vector<8x32xf32>
    %cst_41 = arith.constant dense<0.000000e+00> : vector<8xf32>
    %96 = vector.multi_reduction <add>, %95, %cst_41 [1] : vector<8x32xf32> to vector<8xf32>
    %97 = vector.shape_cast %96 : vector<8xf32> to vector<8x1xf32>
    %cst_42 = arith.constant 3.200000e+01 : f32
    %98 = vector.broadcast %cst_42 : f32 to vector<8x1xf32>
    %99 = arith.divf %97, %98 : vector<8x1xf32>
    %100 = vector.broadcast %99 : vector<8x1xf32> to vector<8x32xf32>
    %101 = arith.subf %95, %100 : vector<8x32xf32>
    %102 = arith.mulf %101, %101 : vector<8x32xf32>
    %cst_43 = arith.constant dense<0.000000e+00> : vector<8xf32>
    %103 = vector.multi_reduction <add>, %102, %cst_43 [1] : vector<8x32xf32> to vector<8xf32>
    %104 = vector.shape_cast %103 : vector<8xf32> to vector<8x1xf32>
    %cst_44 = arith.constant 3.200000e+01 : f32
    %105 = vector.broadcast %cst_44 : f32 to vector<8x1xf32>
    %106 = arith.divf %104, %105 : vector<8x1xf32>
    %107 = vector.broadcast %99 : vector<8x1xf32> to vector<8x32xf32>
    %108 = arith.subf %95, %107 : vector<8x32xf32>
    %cst_45 = arith.constant 9.99999974E-6 : f32
    %109 = vector.broadcast %cst_45 : f32 to vector<8x1xf32>
    %110 = arith.addf %106, %109 : vector<8x1xf32>
    %111 = math.rsqrt %110 : vector<8x1xf32>
    %112 = vector.broadcast %111 : vector<8x1xf32> to vector<8x32xf32>
    %113 = arith.mulf %108, %112 : vector<8x32xf32>
    %114 = vector.shape_cast %80 : vector<32xf32> to vector<1x32xf32>
    %115 = vector.broadcast %114 : vector<1x32xf32> to vector<8x32xf32>
    %116 = arith.mulf %113, %115 : vector<8x32xf32>
    %117 = vector.shape_cast %82 : vector<32xf32> to vector<1x32xf32>
    %118 = vector.broadcast %117 : vector<1x32xf32> to vector<8x32xf32>
    %119 = arith.addf %116, %118 : vector<8x32xf32>
    %cst_46 = arith.constant dense<0.000000e+00> : vector<8x32xf32>
    %120 = tpu.matmul %119, %74, %cst_46 {dimension_numbers = #tpu.dot_dimension_numbers<[1], [0], [0], [1], [0, 0, 1, 1], [], []>} : vector<8x32xf32>, vector<32x32xf32>, vector<8x32xf32> -> vector<8x32xf32>
    %121 = vector.shape_cast %84 : vector<32xf32> to vector<1x32xf32>
    %122 = vector.broadcast %121 : vector<1x32xf32> to vector<8x32xf32>
    %123 = arith.addf %120, %122 : vector<8x32xf32>
    %cst_47 = arith.constant 0.000000e+00 : f32
    %124 = vector.broadcast %cst_47 : f32 to vector<8x32xf32>
    %125 = arith.maximumf %123, %124 : vector<8x32xf32>
    %cst_48 = arith.constant dense<0.000000e+00> : vector<8x32xf32>
    %126 = tpu.matmul %125, %76, %cst_48 {dimension_numbers = #tpu.dot_dimension_numbers<[1], [0], [0], [1], [0, 0, 1, 1], [], []>} : vector<8x32xf32>, vector<32x32xf32>, vector<8x32xf32> -> vector<8x32xf32>
    %127 = vector.shape_cast %86 : vector<32xf32> to vector<1x32xf32>
    %128 = vector.broadcast %127 : vector<1x32xf32> to vector<8x32xf32>
    %129 = arith.addf %126, %128 : vector<8x32xf32>
    %130 = arith.addf %119, %129 : vector<8x32xf32>
    %cst_49 = arith.constant dense<0.000000e+00> : vector<8xf32>
    %131 = vector.multi_reduction <add>, %130, %cst_49 [1] : vector<8x32xf32> to vector<8xf32>
    %132 = vector.shape_cast %131 : vector<8xf32> to vector<8x1xf32>
    %cst_50 = arith.constant 3.200000e+01 : f32
    %133 = vector.broadcast %cst_50 : f32 to vector<8x1xf32>
    %134 = arith.divf %132, %133 : vector<8x1xf32>
    %135 = vector.broadcast %134 : vector<8x1xf32> to vector<8x32xf32>
    %136 = arith.subf %130, %135 : vector<8x32xf32>
    %137 = arith.mulf %136, %136 : vector<8x32xf32>
    %cst_51 = arith.constant dense<0.000000e+00> : vector<8xf32>
    %138 = vector.multi_reduction <add>, %137, %cst_51 [1] : vector<8x32xf32> to vector<8xf32>
    %139 = vector.shape_cast %138 : vector<8xf32> to vector<8x1xf32>
    %cst_52 = arith.constant 3.200000e+01 : f32
    %140 = vector.broadcast %cst_52 : f32 to vector<8x1xf32>
    %141 = arith.divf %139, %140 : vector<8x1xf32>
    %142 = vector.broadcast %134 : vector<8x1xf32> to vector<8x32xf32>
    %143 = arith.subf %130, %142 : vector<8x32xf32>
    %cst_53 = arith.constant 9.99999974E-6 : f32
    %144 = vector.broadcast %cst_53 : f32 to vector<8x1xf32>
    %145 = arith.addf %141, %144 : vector<8x1xf32>
    %146 = math.rsqrt %145 : vector<8x1xf32>
    %147 = vector.broadcast %146 : vector<8x1xf32> to vector<8x32xf32>
    %148 = arith.mulf %143, %147 : vector<8x32xf32>
    %149 = vector.shape_cast %88 : vector<32xf32> to vector<1x32xf32>
    %150 = vector.broadcast %149 : vector<1x32xf32> to vector<8x32xf32>
    %151 = arith.mulf %148, %150 : vector<8x32xf32>
    %152 = vector.shape_cast %90 : vector<32xf32> to vector<1x32xf32>
    %153 = vector.broadcast %152 : vector<1x32xf32> to vector<8x32xf32>
    %154 = arith.addf %151, %153 : vector<8x32xf32>
    %155 = vector.shape_cast %154 : vector<8x32xf32> to vector<1x8x32xf32>
    %c0_54 = arith.constant 0 : index
    %c0_55 = arith.constant 0 : index
    %c0_56 = arith.constant 0 : index
    %156 = vector.load %arg8[%c0_54, %c0_55, %c0_56] : memref<1x8x32xf32, #tpu.memory_space<vmem>>, vector<1x8x32xf32>
    tpu.vector_store %arg8[%c0_54, %c0_55, %c0_56], %155 {strides = array<i32>} : memref<1x8x32xf32, #tpu.memory_space<vmem>>, vector<1x8x32xf32>,
    return
  }
  func.func @transform_0(%arg0: i32) -> (i32, i32, i32) {
    %c0_i32 = arith.constant 0 : i32
    %c0_i32_0 = arith.constant 0 : i32
    %c0_i32_1 = arith.constant 0 : i32
    return %arg0, %c0_i32, %c0_i32_0 : i32, i32, i32
  }
  func.func @transform_1(%arg0: i32) -> (i32, i32, i32) {
    %c0_i32 = arith.constant 0 : i32
    %c0_i32_0 = arith.constant 0 : i32
    %c0_i32_1 = arith.constant 0 : i32
    return %arg0, %c0_i32, %c0_i32_0 : i32, i32, i32
  }
  func.func @transform_2(%arg0: i32) -> (i32, i32, i32) {
    %c0_i32 = arith.constant 0 : i32
    %c0_i32_0 = arith.constant 0 : i32
    %c0_i32_1 = arith.constant 0 : i32
    return %arg0, %c0_i32, %c0_i32_0 : i32, i32, i32
  }
  func.func @transform_3(%arg0: i32) -> (i32, i32) {
    %c0_i32 = arith.constant 0 : i32
    %c0_i32_0 = arith.constant 0 : i32
    %c0_i32_1 = arith.constant 0 : i32
    return %c0_i32, %c0_i32_0 : i32, i32
  }
  func.func @transform_4(%arg0: i32) -> (i32, i32, i32) {
    %c0_i32 = arith.constant 0 : i32
    %c0_i32_0 = arith.constant 0 : i32
    %c0_i32_1 = arith.constant 0 : i32
    %c0_i32_2 = arith.constant 0 : i32
    return %c0_i32, %c0_i32_0, %c0_i32_1 : i32, i32, i32
  }
  func.func @transform_5(%arg0: i32) -> (i32, i32) {
    %c0_i32 = arith.constant 0 : i32
    %c0_i32_0 = arith.constant 0 : i32
    %c0_i32_1 = arith.constant 0 : i32
    return %c0_i32, %c0_i32_0 : i32, i32
  }
  func.func @transform_6(%arg0: i32) -> (i32, i32) {
    %c0_i32 = arith.constant 0 : i32
    %c0_i32_0 = arith.constant 0 : i32
    %c0_i32_1 = arith.constant 0 : i32
    return %c0_i32, %c0_i32_0 : i32, i32
  }
  func.func @transform_7(%arg0: i32) -> (i32, i32, i32) {
    %c0_i32 = arith.constant 0 : i32
    %c0_i32_0 = arith.constant 0 : i32
    %c0_i32_1 = arith.constant 0 : i32
    return %arg0, %c0_i32, %c0_i32_0 : i32, i32, i32
  }
}

</mosaic_0001>

<bundles_post_ra>
// kernel: tpu_custom_call.1
= control target key start
LH: loop header
LB: loop body
LE: loop exit
PB: predicated region body
PF: predicated region fallthrough
CT: control target
= control target key end

     0   :  { %s2234_s0 = inlined_call_operand.hbm [shape: f32[2,8,32], index: 0, kind: input, shape index: {}]   ;;  %s2235_s1 = inlined_call_operand.hbm [shape: f32[2,8,32], index: 1, kind: input, shape index: {}]   ;;  %s2236_s2 = inlined_call_operand.hbm [shape: f32[2,8,32], index: 2, kind: input, shape index: {}]   ;;  %s2237_s3 = inlined_call_operand.hbm [shape: f32[96,96], index: 3, kind: input, shape index: {}]   ;;  %s2238_s4 = inlined_call_operand.hbm [shape: f32[3,32,32], index: 4, kind: input, shape index: {}]   ;;  %s2239_s5 = inlined_call_operand.vmem [shape: f32[1,96], index: 5, kind: input, shape index: {}]   ;;  %s2240_s6 = inlined_call_operand.vmem [shape: f32[7,32], index: 6, kind: input, shape index: {}]   ;;  %s2241_s7 = inlined_call_operand.hbm [shape: f32[2,8,32], index: 7, kind: output, shape index: {}]  }
   0x1   :  { %2257 = sst [smem:[#allocation21_spill]] %s2234_s0 }
   0x2   :  { %2258 = sst [smem:[#allocation22_spill]] %s2237_s3 }
   0x3   :  { %12 = vsyncpa [#allocation3], 0 }
   0x4   :  { %14 = vsyncpa [#allocation3 + $0x1], 0 }
   0x5   :  { %15 = vsyncpa [#allocation6], 0 }
   0x6   :  { %17 = vsyncpa [#allocation6 + $0x1], 0 }
   0x7   :  { %18 = vsyncpa [#allocation9], 0 }
   0x8   :  { %19 = vsyncpa [#allocation4], 0 }
   0x9   :  { %21 = vsyncpa [#allocation4 + $0x1], 0  ;;  %s1822_s24 = smov 0   ;;  %s1824_s25 = smov 0  }
   0xa   :  { %s1826_s26 = smov 0   ;;  %s1828_s27 = smov 0  }
   0xb LB: > { %2259 = sst [smem:[#allocation16_spill]] %s1754_s24  ;;  %s1843_s28 = sadd.s32 4294967295, %s1766_s27   ;;  %s1766_s27 = sphi %s1828_s27, %s2296_s27   ;;  %s1762_s26 = sphi %s1826_s26, %s2300_s26   ;;  %s1758_s25 = sphi %s1824_s25, %s2299_s25   ;;  %s1754_s24 = sphi %s1822_s24, %s2298_s24  }
   0xc   : > { %2260 = sst [smem:[#allocation17_spill]] %s1766_s27  ;;  %s1280_s29 = sadd.s32 4294967294, %s1766_s27  }
   0xd   : > { %p47_p0 = scmp.ne.s32.totalorder %s1758_s25, %s1754_s24  ;;  %p2247_p1 = scmp.eq.s32.totalorder %s1843_s28, 0 }
   0xe   : > { %p207_p2 = scmp.eq.s32.totalorder %s1843_s28, 1  ;;  %p213_p3 = scmp.eq.s32.totalorder %s1280_s29, 1 }
   0xf   : > { %p1852_p4 = por %p2247_p1, %p47_p0  ;;  %p1281_p5 = scmp.ge.s32.totalorder %s1766_s27, 1 }
  0x10   : > { %p1857_p6 = por %p213_p3, %p47_p0  ;;  %p220_p7 = scmp.lt.s32.totalorder %s1766_s27, 3 }
  0x11   : > { %s2261_s30 = scalar_select %p1852_p4, 1, 0 }
  0x12   : > { %s2262_s8 = scalar_select %p1857_p6, 1, 0 }
  0x13   : > { %p1862_p8 = pnand %p1281_p5, %p220_p7  ;;  %s1768_s10 = smov [#allocation8]  }
  0x14   : > { %2263 = sst [smem:[#allocation18_spill]] %s2262_s8  ;;  %s232_s11 = sshll.u32 %s1768_s10, 4  ;;  %s233_s11 = int_to_ptr.vmem [resolvable:$true] %s232_s11 }
  0x15   : > { %s2264_s9 = scalar_select %p1862_p8, 1, 0 }
  0x16   : > { %p1481_p9 = pneg %p1862_p8  ;;  %s1876_s13 = sadd.s32 1, %s1766_s27  }
  0x17   : > { %2266 = sst [smem:[#allocation19_spill]] %s1876_s13  ;;  %s34_s14 = sadd.s32 1, %s1762_s26 }
  0x18   : > { %p1871_p11 = pnand %p1481_p9, %p2247_p1  ;;  %s31_s15 = ssub.s32 %s1766_s27, %s1876_s13 }
  0x19   : > { %s1569_s16 = scalar_lea.vmem %s233_s11, 1536  ;;  %p1577_p5 = scmp.lt.s32.totalorder %s233_s11, %s233_s11 }
  0x1a   : > { %s2265_s12 = scalar_select %p1871_p11, 1, 0 }
  0x1b   : > { %p2248_p12 = pneg %p1871_p11  ;;  %p1570_p13 = scmp.ne.s32.totalorder %s233_s11, %s1569_s16 }
  0x1c   : > { %p1578_p7 = scmp.lt.s32.totalorder %s1569_s16, %s1569_s16 }
  0x1d   : > { %p1572_p0 = pnand %p1570_p13, %p2248_p12 }
  0x1e   : > { %p1579_p9 = por %p1578_p7, %p1577_p5 }
  0x1f   : > { %p1573_p3 = pneg %p1572_p0 }
  0x21   : > { %p1580_p10 = pnand %p1579_p9, %p1573_p3 }
  0x23   : > { %1583 = shalt.err (!%p1580_p10)
}
  0x24   : > { %s2242_s17 = smov 128   ;;  %s2244_s18 = smov 8  }
  0x25   : > { %s2267_s3 = sld [smem:[#allocation22_spill]]  ;;  %p32_p10 = scmp.eq.s32.totalorder %s31_s15, 0 }
  0x26   : > { %p41_p13 = scmp.ne.s32.totalorder %s1762_s26, %s1758_s25  ;;  %p42_p0 = scmp.eq.s32.totalorder %s1766_s27, 0 }
  0x27   : > { %p1504_p3 = scmp.lt.s32.totalorder %s1766_s27, 2  ;;  %s2243_s23 = sand.u32 1, %s1762_s26  }
  0x28   : > { %s1899_s21 = scalar_select %p32_p10, %s1762_s26, %s34_s14  }
  0x29   : > { %p43_p5 = por %p42_p0, %p41_p13  ;;  %p1903_p7 = por %p207_p2, %p41_p13 }
  0x2a   : > { %2268 = sst [smem:[#allocation20_spill]] %s1899_s21  ;;  %s1909_s29 = sshll.u32 %s1766_s27, 7 }
  0x2b   : > { %1484 = dma.hbm_to_vmem [thread:$0]  (!%p1871_p11), %s2267_s3, 1536, %s233_s11, [#allocation9], %s2242_s17, %s2242_s17, %s2244_s18  }
  0x2c   : > { %s2269_s22 = scalar_select %p1903_p7, 1, 0 }
  0x2d   : > { %s1913_s10 = sshll.u32 %s2243_s23, 3  ;;  %p1915_p9 = pnand %p1504_p3, %p43_p5 }
  0x2e   : > { %s283_s14 = sand.u32 1, %s1766_s27   ;;  %s1924_s19 = scalar_lea.hbm %s2235_s1, %s1909_s29 }
  0x2f   : > { %s287_s20 = scalar_lea.vmem [#allocation5], %s1913_s10  ;;  %s1927_s23 = scalar_lea.sflag [#allocation6], %s283_s14 }
  0x30   : > { %s294_s17 = sshll.u32 %s287_s20, 4  ;;  %s1584_s18 = scalar_lea.hbm %s1924_s19, 128  ;;  %s295_s17 = int_to_ptr.vmem [resolvable:$true] %s294_s17 }
  0x31   : > { %p1585_p2 = scmp.ne.s32.totalorder %s1924_s19, %s1584_s18  ;;  %p1933_p10 = pneg %p1915_p9 }
  0x32   : > { %s1589_s21 = scalar_lea.hbm %s2235_s1, 256  ;;  %p1590_p3 = scmp.lt.s32.totalorder %s1924_s19, %s2235_s1 }
  0x33   : > { %p1587_p13 = pnand %p1933_p10, %p1585_p2  ;;  %p1591_p5 = scmp.lt.s32.totalorder %s1589_s21, %s1584_s18 }
  0x35   : > { %p1588_p0 = pneg %p1587_p13  ;;  %p1592_p1 = por %p1591_p5, %p1590_p3 }
  0x37   : > { %p1593_p12 = pnand %p1592_p1, %p1588_p0 }
  0x39   : > { %1596 = shalt.err (!%p1593_p12)
}
  0x3a   : > { %s1597_s14 = scalar_lea.vmem %s295_s17, 128  ;;  %s1771_s27 = smov [#allocation5]  }
  0x3b   : > { %p1598_p6 = scmp.ne.s32.totalorder %s295_s17, %s1597_s14  ;;  %s1602_s8 = sshll.u32 %s1771_s27, 4  ;;  %s1603_s8 = int_to_ptr.vmem [resolvable:$false] %s1602_s8 }
  0x3c   : > { %s1604_s24 = scalar_lea.vmem %s1603_s8, 256  ;;  %p1605_p2 = scmp.lt.s32.totalorder %s295_s17, %s1603_s8 }
  0x3d   : > { %p1600_p7 = pnand %p1598_p6, %p1933_p10  ;;  %p1606_p13 = scmp.lt.s32.totalorder %s1604_s24, %s1597_s14 }
  0x3f   : > { %p1601_p4 = pneg %p1600_p7  ;;  %p1607_p8 = por %p1606_p13, %p1605_p2 }
  0x41   : > { %p1608_p11 = pnand %p1607_p8, %p1601_p4 }
  0x43   : > { %1611 = shalt.err (!%p1608_p11)
}
  0x44   : > { %1494 = dma.hbm_to_vmem [thread:$0]  (!%p1915_p9), %s1924_s19, 128, %s295_s17, %s1927_s23  }
  0x45   : > { %s1772_s13 = smov [#allocation10]   ;;  %p2272_p6 = scmp.ne.s32.totalorder %s2265_s12, 0 }
  0x46   : > { %s245_s18 = sshll.u32 %s1772_s13, 4  ;;  %s246_s18 = int_to_ptr.vmem [resolvable:$true] %s245_s18 }
  0x47   : > { %s1623_s21 = scalar_lea.vmem %s246_s18, 1536  ;;  %p2273_p12 = pneg %p2272_p6 }
  0x48   : > { %p1624_p1 = scmp.ne.s32.totalorder %s246_s18, %s1623_s21  ;;  %p1631_p3 = scmp.lt.s32.totalorder %s246_s18, %s246_s18 }
  0x49   : > { %p1632_p5 = scmp.lt.s32.totalorder %s1623_s21, %s1623_s21 }
  0x4a   : > { %p1626_p7 = pnand %p1624_p1, %p2273_p12 }
  0x4b   : > { %p1633_p2 = por %p1632_p5, %p1631_p3 }
  0x4c   : > { %p1627_p0 = pneg %p1626_p7 }
  0x4e   : > { %p1634_p4 = pnand %p1633_p2, %p1627_p0 }
  0x50   : > { %1637 = shalt.err (!%p1634_p4)
}
  0x51   : > { %s2274_s24 = smov 8   ;;  %s2275_s27 = smov 128  }
  0x52   : > { %1487 = dma.hbm_to_vmem [thread:$0]  (!%p2272_p6), %s2238_s4, 1536, %s246_s18, [#allocation9], %s2275_s27, %s2275_s27, %s2274_s24  }
  0x53   : > { %s2276_s0 = sld [smem:[#allocation21_spill]]  ;;  %s269_s12 = scalar_lea.vmem [#allocation2], %s1913_s10 }
  0x54   : > { %s276_s20 = sshll.u32 %s269_s12, 4  ;;  %s2277_s14 = sand.u32 1, %s1762_s26   ;;  %s277_s20 = int_to_ptr.vmem [resolvable:$true] %s276_s20 }
  0x55   : > { %s266_s13 = scalar_lea.sflag [#allocation3], %s2277_s14 }
  0x59   : > { %s1967_s16 = scalar_lea.hbm %s2276_s0, %s1909_s29  ;;  %s1643_s24 = scalar_lea.hbm %s2276_s0, 256 }
  0x5a   : > { %s1638_s21 = scalar_lea.hbm %s1967_s16, 128  ;;  %p1644_p1 = scmp.lt.s32.totalorder %s1967_s16, %s2276_s0 }
  0x5b   : > { %p1639_p8 = scmp.ne.s32.totalorder %s1967_s16, %s1638_s21  ;;  %p1645_p6 = scmp.lt.s32.totalorder %s1643_s24, %s1638_s21 }
  0x5d   : > { %p1641_p11 = pnand %p1639_p8, %p1933_p10  ;;  %p1646_p12 = por %p1645_p6, %p1644_p1 }
  0x5f   : > { %p1642_p13 = pneg %p1641_p11 }
  0x61   : > { %p1647_p7 = pnand %p1646_p12, %p1642_p13 }
  0x63   : > { %1650 = shalt.err (!%p1647_p7)
}
  0x64   : > { %s1651_s19 = scalar_lea.vmem %s277_s20, 128  ;;  %s1773_s15 = smov [#allocation2]  }
  0x65   : > { %p1652_p0 = scmp.ne.s32.totalorder %s277_s20, %s1651_s19  ;;  %s1656_s12 = sshll.u32 %s1773_s15, 4  ;;  %s1657_s12 = int_to_ptr.vmem [resolvable:$false] %s1656_s12 }
  0x66   : > { %s1658_s14 = scalar_lea.vmem %s1657_s12, 256  ;;  %p1659_p2 = scmp.lt.s32.totalorder %s277_s20, %s1657_s12 }
  0x67   : > { %p1654_p3 = pnand %p1652_p0, %p1933_p10  ;;  %p1660_p4 = scmp.lt.s32.totalorder %s1658_s14, %s1651_s19 }
  0x69   : > { %p1655_p5 = pneg %p1654_p3  ;;  %p1661_p8 = por %p1660_p4, %p1659_p2 }
  0x6b   : > { %p1662_p11 = pnand %p1661_p8, %p1655_p5 }
  0x6d   : > { %1665 = shalt.err (!%p1662_p11)
}
  0x6e   : > { %1491 = dma.hbm_to_vmem [thread:$0]  (!%p1915_p9), %s1967_s16, 128, %s277_s20, %s266_s13  }
  0x6f   : > { %s310_s18 = scalar_lea.hbm %s2236_s2, %s1909_s29  ;;  %s305_s24 = scalar_lea.vmem [#allocation7], %s1913_s10 }
  0x70   : > { %s312_s27 = sshll.u32 %s305_s24, 4  ;;  %s1666_s17 = scalar_lea.hbm %s310_s18, 128  ;;  %s313_s27 = int_to_ptr.vmem [resolvable:$true] %s312_s27 }
  0x71   : > { %p1667_p13 = scmp.ne.s32.totalorder %s310_s18, %s1666_s17  ;;  %s1671_s12 = scalar_lea.hbm %s2236_s2, 256 }
  0x72   : > { %p1672_p12 = scmp.lt.s32.totalorder %s310_s18, %s2236_s2  ;;  %p1673_p7 = scmp.lt.s32.totalorder %s1671_s12, %s1666_s17 }
  0x73   : > { %p1669_p1 = pnand %p1667_p13, %p1933_p10 }
  0x74   : > { %p1674_p0 = por %p1673_p7, %p1672_p12 }
  0x75   : > { %p1670_p6 = pneg %p1669_p1 }
  0x77   : > { %p1675_p3 = pnand %p1674_p0, %p1670_p6 }
  0x79   : > { %1678 = shalt.err (!%p1675_p3)
}
  0x7a   : > { %s1679_s29 = scalar_lea.vmem %s313_s27, 128  ;;  %s1774_s10 = smov [#allocation7]  }
  0x7b   : > { %p1680_p5 = scmp.ne.s32.totalorder %s313_s27, %s1679_s29  ;;  %s1684_s16 = sshll.u32 %s1774_s10, 4  ;;  %s1685_s16 = int_to_ptr.vmem [resolvable:$false] %s1684_s16 }
  0x7c   : > { %s1686_s20 = scalar_lea.vmem %s1685_s16, 256  ;;  %p1687_p8 = scmp.lt.s32.totalorder %s313_s27, %s1685_s16 }
  0x7d   : > { %p1682_p2 = pnand %p1680_p5, %p1933_p10  ;;  %p1688_p11 = scmp.lt.s32.totalorder %s1686_s20, %s1679_s29 }
  0x7f   : > { %p1683_p4 = pneg %p1682_p2  ;;  %p1689_p13 = por %p1688_p11, %p1687_p8 }
  0x81   : > { %p1690_p1 = pnand %p1689_p13, %p1683_p4 }
  0x83   : > { %1693 = shalt.err (!%p1690_p1)
}
  0x84   : > { %1497 = dma.hbm_to_vmem [thread:$0]  (!%p1915_p9), %s310_s18, 128, %s313_s27, %s1927_s23  }
  0x85   : > { %p2278_p6 = scmp.ne.s32.totalorder %s2264_s9, 0 }
  0x86   : > { %s2009_s0 = sand.u32 (!%p2278_p6), 1, %s1758_s25   ;;  %p2279_p10 = scmp.ne.s32.totalorder (!%p2278_p6), %s2261_s30, 0 }
  0x87   : > { %321 = sbr.rel (%p2278_p6) target bundleno = 2575 (0xa0f), region = 48  ;;  %s2012_s3 = sshll.u32 (!%p2278_p6), %s2009_s0, 3 }
  0x88   : > { %s324_s13 = scalar_lea.sflag (!%p2278_p6), [#allocation3], %s2009_s0  ;;  %s327_s21 = scalar_lea.vmem (!%p2278_p6), [#allocation2], %s2012_s3 }
  0x8c   : > { %1737 = dma.done.wait (%p2279_p10), %s324_s13, 128  }
  0x8d   : > { %1739 = vsyncadd (%p2279_p10), %s324_s13, 4294967168  ;;  %s332_s9 = sand.u32 1, %s1843_s28   ;;  %s336_s11 = scalar_lea.vmem [#allocation5], %s2012_s3 }
  0x8e   : > { %s333_s23 = scalar_lea.sflag [#allocation6], %s332_s9 }
  0x8f   : > { %1741 = dma.done.wait (%p2279_p10), %s333_s23, 256  }
  0x90   : > { %1743 = vsyncadd (%p2279_p10), %s333_s23, 4294967040  ;;  %s345_s8 = scalar_lea.vmem [#allocation7], %s2012_s3  ;;  %p2280_p9 = scmp.eq.s32.totalorder %s1843_s28, 0 }
  0x92   : > { %1745 = dma.done.wait (%p2280_p9), [#allocation9], 3072   ;;  %p2281_p12 = pmov %p2280_p9 }
  0x93   : > { %v502_v0 = vlaneseq  ;;  %v1775_v1 = vmov 0.0   ;;  %vm1776_vm0 = vmmov 0   ;;  %v395_v10 = vld [vmem:[%s336_s11] sm:$0xff]  ;;  %v420_v11 = vld [vmem:[#allocation8 + $0x58] sm:$0xff]  ;;  %s1777_s30 = smov 32   ;;  %v419_v13 = vld [vmem:[#allocation8 + $0x50] sm:$0xff] }
  0x94   : > { %1747 = vsyncadd (%p2281_p12), [#allocation9], 4294964224  ;;  %1372 = vmatprep.subr.mxu0 %v1775_v1  ;;  %1399 = vmatprep.subr.mxu1 %v1775_v1  ;;  %v396_v17 = vld [vmem:[%s345_s8] sm:$0xff]  ;;  %v418_v18 = vld [vmem:[#allocation8 + $0x48] sm:$0xff]  ;;  %s1778_s18 = smov 64   ;;  %vm405_vm5 = vcmask 261120  }
  0x95   : > { %1396 = vmatprep.mubr.msk.f32.mxu0 %vm1776_vm0, %v1775_v1  ;;  %v2035_v2 = vshrl.u32 %v502_v0, 7  ;;  %v2037_v3 = vand.u32 127, %v502_v0  ;;  %1407 = vmatprep.mubr.msk.f32.mxu1 %vm1776_vm0, %v1775_v1  ;;  %v417_v21 = vld [vmem:[#allocation8 + $0x40] sm:$0xff]  ;;  %v416_v24 = vld [vmem:[#allocation8 + $0x38] sm:$0xff]  ;;  %v415_v26 = vld [vmem:[#allocation8 + $0x30] sm:$0xff]  ;;  %vm407_vm6 = vcmask 523264  }
  0x96   : > { %398 = vrot.lane.b32.xlu0 %v395_v10, %s1777_s30  ;;  %1373 = vmatpush3.msra.mxu0 %v420_v11  ;;  %v414_v28 = vld [vmem:[#allocation8 + $0x28] sm:$0xff]  ;;  %v413_v29 = vld [vmem:[#allocation8 + $0x20] sm:$0xff]  ;;  %v412_v30 = vld [vmem:[#allocation8 + $0x18] sm:$0xff]  ;;  %vm428_vm7 = vcmask 785408   ;;  %s1779_s17 = smov 96   ;;  %s1135_s15 = scalar_lea.sflag [#allocation4], %s2009_s0 }
  0x97   : > { %v506_v4 = vadd.s32 24, %v2035_v2  ;;  %v513_v5 = vshra.s32 %v2037_v3, 3  ;;  %v505_v6 = vadd.s32 16, %v2035_v2  ;;  %v504_v7 = vadd.s32 8, %v2035_v2  ;;  %1374 = vmatprep.subr.mxu0 %v1775_v1  ;;  %v411_v31 = vld [vmem:[#allocation8 + $0x10] sm:$0xff]  ;;  %v410_v32 = vld [vmem:[#allocation8 + $0x8] sm:$0xff] }
  0x98   : > { %v507_v16 = vshra.s32 %v2035_v2, 3  ;;  %1375 = vmatpush3.msra.mxu0 %v419_v13  ;;  %v409_v33 = vld [vmem:[#allocation8] sm:$0xff]  ;;  %v2100_v35 = vld [vmem:[%s327_s21] sm:$0xff]  ;;  %v1780_v13 = vmov 1.0   ;;  %p2290_p0 = scmp.ne.s32.totalorder %s2269_s22, 0  ;;  %s1781_s14 = smov [#allocation11]  }
  0x99   : > { %v510_v8 = vshra.s32 %v506_v4, 3  ;;  %v509_v9 = vshra.s32 %v505_v6, 3  ;;  %v508_v12 = vshra.s32 %v504_v7, 3  ;;  %1376 = vmatprep.subr.mxu0 %v1775_v1  ;;  %v1298_v41 = vld [vmem:[%s2239_s5] ss:$0 sm:$0xff]  ;;  %v656_v6 = vand.u32 7, %v2037_v3 }
  0x9a   : > { %402 = vrot.lane.b32.xlu0 %v396_v17, %s1778_s18  ;;  %1377 = vmatpush3.msra.mxu0 %v418_v18  ;;  %vm2074_vm4 = vcmp.eq.s32.totalorder %v507_v16, %v513_v5  ;;  %v834_v15 = vld [vmem:[#allocation10 + $0x18] sm:$0xff]  ;;  %v833_v17 = vld [vmem:[#allocation10 + $0x10] sm:$0xff]  ;;  %v832_v18 = vld [vmem:[#allocation10 + $0x8] sm:$0xff]  ;;  %s1698_s29 = sshll.u32 %s1781_s14, 4  ;;  %s1699_s29 = int_to_ptr.vmem [resolvable:$false] %s1698_s29 }
  0x9b   : > { %vm2046_vm1 = vcmp.eq.s32.totalorder %v510_v8, %v513_v5  ;;  %vm2050_vm2 = vcmp.eq.s32.totalorder %v509_v9, %v513_v5  ;;  %vm2063_vm3 = vcmp.eq.s32.totalorder %v508_v12, %v513_v5  ;;  %1378 = vmatprep.subr.mxu0 %v1775_v1  ;;  %v1300_v27 = vsel %vm2074_vm4, 1.0, %v1775_v1 }
  0x9c   : > { %v2059_v19 = vsel %vm2046_vm1, 1.0, %v1775_v1  ;;  %v2071_v22 = vsel %vm2050_vm2, 1.0, %v1775_v1  ;;  %v1301_v25 = vsel %vm2063_vm3, 1.0, %v1775_v1  ;;  %1379 = vmatpush3.msra.mxu0 %v417_v21  ;;  %vm657_vm8 = vcmp.gt.s32.totalorder %v656_v6, %v2035_v2 }
  0x9d   : > { %536 = vrot.lane.b32.xlu1 %v2059_v19, %s1777_s30  ;;  %1380 = vmatprep.subr.mxu0 %v1775_v1  ;;  %v658_v8 = vsel %vm657_vm8, -1e+30, %v1775_v1 }
  0x9e   : > { %1381 = vmatpush3.msra.mxu0 %v416_v24  ;;  %532 = vrot.lane.b32.xlu0 %v1301_v25, %s1777_s30  ;;  %v831_v24 = vld [vmem:[#allocation10] sm:$0xff] }
  0x9f   : > { %1382 = vmatprep.subr.mxu0 %v1775_v1 }
  0xa0   : > { %1383 = vmatpush3.msra.mxu0 %v415_v26 }
  0xa1   : > { %534 = vrot.lane.b32.xlu1 %v2071_v22, %s1777_s30  ;;  %1384 = vmatprep.subr.mxu0 %v1775_v1 }
  0xa2   : > { %1385 = vmatpush3.msra.mxu0 %v414_v28 }
  0xa3   : > { %1386 = vmatprep.subr.mxu0 %v1775_v1 }
  0xa4   : > { %1387 = vmatpush3.msra.mxu0 %v413_v29 }
  0xa5   : > { %530 = vrot.lane.b32.xlu1 %v1300_v27, %s1777_s30  ;;  %1388 = vmatprep.subr.mxu0 %v1775_v1  ;;  %s1326_s30 = sshll.u32 %s1843_s28, 7  ;;  %s1700_s28 = scalar_lea.vmem %s1699_s29, 256 }
  0xa6   : > { %1389 = vmatpush3.msra.mxu0 %v412_v30  ;;  %s1146_s19 = scalar_lea.hbm %s2241_s7, %s1326_s30 }
  0xa7   : > { %1390 = vmatprep.subr.mxu0 %v1775_v1 }
  0xa8   : > { %1391 = vmatpush3.msra.mxu0 %v411_v31 }
  0xa9   : > { %1392 = vmatprep.subr.mxu0 %v1775_v1 }
  0xaa   : > { %1393 = vmatpush3.msra.mxu0 %v410_v32 }
  0xab   : > { %1394 = vmatprep.subr.mxu0 %v1775_v1 }
  0xac   : > { %1395 = vmatpush3.msra.mxu0 %v409_v33 }
  0xad   : > { %1421 = vmatprep.subr.mxu0 %v1775_v1 }
 0x108   : > { %v399_v34 = vpop.permute.xlu0 %398 }
 0x109   : > { %v406_v36 = vsel %vm405_vm5, %v2100_v35, %v399_v34 }
 0x10c   : > { %v403_v37 = vpop.permute.xlu0 %402 }
 0x10d   : > { %v408_v38 = vsel %vm407_vm6, %v406_v36, %v403_v37 }
 0x10e   : > { %1397 = vmatmul.mubr.msk.f32.vlgmr.msra.gmra.mxu0 %vm428_vm7, %v408_v38 }
 0x10f   : > { %1429 = vmatprep.mubr.msk.f32.mxu0 %vm1776_vm0, %v1775_v1  ;;  %v537_v39 = vpop.permute.xlu1 %536 }
 0x110   : > { %v533_v48 = vpop.permute.xlu0 %532 }
 0x113   : > { %v535_v40 = vpop.permute.xlu1 %534 }
 0x117   : > { %v531_v47 = vpop.permute.xlu1 %530 }
 0x1ce   : > { %v498_v42 = vpop.f32.mrf.mxu0 }
 0x1cf   : > { %v499_v43 = vadd.f32 %v1298_v41, %v498_v42  ;;  %v837_v41 = vld [vmem:[#allocation10 + $0x28] sm:$0xff]  ;;  %v844_v42 = vld [vmem:[#allocation10 + $0x58] sm:$0xff] }
 0x1d0   : > { %v1398_v44 = vpop.f32.mrf.mxu0 }
 0x1d1   : > { %v545_v45 = vmul.f32 %v537_v39, %v499_v43  ;;  %v544_v46 = vmul.f32 %v535_v40, %v499_v43  ;;  %v542_v49 = vmul.f32 %v531_v47, %v499_v43  ;;  %v543_v50 = vmul.f32 %v533_v48, %v499_v43  ;;  %v839_v39 = vld [vmem:[#allocation10 + $0x38] sm:$0xff]  ;;  %v838_v40 = vld [vmem:[#allocation10 + $0x30] sm:$0xff] }
 0x1d2   : > { %v1317_v47 = vld [vmem:[%s2240_s6 + $0x1] ss:$0 sm:$0xff] }
 0x1d3   : > { %572 = vrot.lane.b32.xlu0 %v545_v45, %s1779_s17  ;;  %570 = vrot.lane.b32.xlu1 %v544_v46, %s1779_s17 }
 0x1d7   : > { %568 = vrot.lane.b32.xlu0 %v543_v50, %s1779_s17  ;;  %566 = vrot.lane.b32.xlu1 %v542_v49, %s1779_s17  ;;  %v1318_v49 = vld [vmem:[%s2240_s6 + $0x2] ss:$0 sm:$0xff] }
 0x1db   : > { %552 = vrot.lane.b32.xlu1 %v2059_v19, %s1778_s18 }
 0x1df   : > { %550 = vrot.lane.b32.xlu1 %v2071_v22, %s1778_s18 }
 0x1e3   : > { %548 = vrot.lane.b32.xlu1 %v1301_v25, %s1778_s18 }
 0x1e7   : > { %546 = vrot.lane.b32.xlu1 %v1300_v27, %s1778_s18  ;;  %v1315_v27 = vld [vmem:[%s2240_s6] ss:$0 sm:$0xff] }
 0x245   : > { %v573_v51 = vpop.permute.xlu0 %572  ;;  %v571_v52 = vpop.permute.xlu1 %570 }
 0x246   : > { %1400 = vmatpush3.xpose.msk.msra.mxu1 %vm405_vm5, %v573_v51 }
 0x247   : > { %1401 = vmatprep.subr.mxu1 %v1775_v1 }
 0x249   : > { %v567_v53 = vpop.permute.xlu1 %566  ;;  %v569_v54 = vpop.permute.xlu0 %568 }
 0x24a   : > { %1402 = vmatpush3.xpose.msk.msra.mxu1 %vm405_vm5, %v571_v52  ;;  %v843_v52 = vld [vmem:[#allocation10 + $0x50] sm:$0xff] }
 0x24b   : > { %1403 = vmatprep.subr.mxu1 %v1775_v1 }
 0x24d   : > { %v553_v55 = vpop.permute.xlu1 %552 }
 0x24e   : > { %v561_v56 = vmul.f32 %v553_v55, %v499_v43  ;;  %1404 = vmatpush3.xpose.msk.msra.mxu1 %vm405_vm5, %v569_v54  ;;  %v841_v54 = vld [vmem:[#allocation10 + $0x40] sm:$0xff]  ;;  %v1319_v55 = vld [vmem:[%s2240_s6 + $0x3] ss:$0 sm:$0xff] }
 0x24f   : > { %1405 = vmatprep.subr.mxu1 %v1775_v1 }
 0x250   : > { %752 = vrot.lane.b32.xlu1 %v561_v56, %s1778_s18 }
 0x251   : > { %v551_v57 = vpop.permute.xlu1 %550 }
 0x252   : > { %v560_v58 = vmul.f32 %v551_v57, %v499_v43  ;;  %1406 = vmatpush3.xpose.msk.msra.mxu1 %vm405_vm5, %v567_v53  ;;  %v842_v53 = vld [vmem:[#allocation10 + $0x48] sm:$0xff] }
 0x253   : > { %1410 = vmatprep.subr.mxu1 %v1775_v1 }
 0x254   : > { %750 = vrot.lane.b32.xlu1 %v560_v58, %s1778_s18 }
 0x255   : > { %1408 = vmatmul.mubr.msk.f32.vlgmr.msra.gmra.mxu1 %vm405_vm5, %v499_v43  ;;  %v549_v59 = vpop.permute.xlu1 %548 }
 0x256   : > { %v559_v60 = vmul.f32 %v549_v59, %v499_v43  ;;  %1418 = vmatprep.mubr.msk.f32.mxu1 %vm1776_vm0, %v1775_v1  ;;  %1411 = vmatpush3.msk.msra.mxu1 %vm2046_vm1, %v1780_v13 }
 0x257   : > { %1412 = vmatprep.subr.mxu1 %v1775_v1 }
 0x258   : > { %748 = vrot.lane.b32.xlu1 %v559_v60, %s1778_s18  ;;  %1413 = vmatpush3.msk.msra.mxu1 %vm2050_vm2, %v1780_v13  ;;  %v1321_v60 = vld [vmem:[%s2240_s6 + $0x4] ss:$0 sm:$0xff] }
 0x259   : > { %v547_v61 = vpop.permute.xlu1 %546  ;;  %1414 = vmatprep.subr.mxu1 %v1775_v1 }
 0x25a   : > { %v558_v62 = vmul.f32 %v547_v61, %v499_v43  ;;  %1415 = vmatpush3.msk.msra.mxu1 %vm2063_vm3, %v1780_v13 }
 0x25b   : > { %1416 = vmatprep.subr.mxu1 %v1775_v1 }
 0x25c   : > { %746 = vrot.lane.b32.xlu1 %v558_v62, %s1778_s18  ;;  %1417 = vmatpush3.msk.msra.mxu1 %vm2074_vm4, %v1780_v13  ;;  %v1323_v13 = vld [vmem:[%s2240_s6 + $0x5] ss:$0 sm:$0xff]  ;;  %s393_s18 = scalar_lea.vmem [#allocation11], %s2012_s3 }
 0x25d   : > { %1432 = vmatprep.subr.mxu1 %v1775_v1  ;;  %s1148_s24 = sshll.u32 %s393_s18, 4  ;;  %s1149_s24 = int_to_ptr.vmem [resolvable:$true] %s1148_s24 }
 0x25e   : > { %s1694_s12 = scalar_lea.vmem %s1149_s24, 128  ;;  %p1701_p2 = scmp.lt.s32.totalorder %s1149_s24, %s1699_s29 }
 0x25f   : > { %p1695_p7 = scmp.ne.s32.totalorder %s1149_s24, %s1694_s12  ;;  %p1702_p4 = scmp.lt.s32.totalorder %s1700_s28, %s1694_s12 }
 0x261   : > { %p1696_p3 = pnand %p1695_p7, %p2290_p0  ;;  %p1703_p8 = por %p1702_p4, %p1701_p2 }
 0x263   : > { %p1697_p5 = pneg %p1696_p3 }
 0x265   : > { %p1704_p11 = pnand %p1703_p8, %p1697_p5 }
 0x2c2   : > { %v753_v63 = vpop.permute.xlu1 %752 }
 0x2c3   : > { %1422 = vmatpush3.msra.mxu0 %v753_v63 }
 0x2c4   : > { %1423 = vmatprep.subr.mxu0 %v1775_v1 }
 0x2c6   : > { %v751_v0 = vpop.permute.xlu1 %750 }
 0x2c7   : > { %1424 = vmatpush3.msra.mxu0 %v751_v0 }
 0x2c8   : > { %1425 = vmatprep.subr.mxu0 %v1775_v1 }
 0x2ca   : > { %v749_v4 = vpop.permute.xlu1 %748 }
 0x2cb   : > { %1426 = vmatpush3.msra.mxu0 %v749_v4 }
 0x2cc   : > { %1427 = vmatprep.subr.mxu0 %v1775_v1 }
 0x2ce   : > { %v747_v5 = vpop.permute.xlu1 %746 }
 0x2cf   : > { %1428 = vmatpush3.msra.mxu0 %v747_v5 }
 0x2d0   : > { %1443 = vmatprep.subr.mxu0 %v1775_v1 }
 0x315   : > { %v651_v7 = vpop.f32.mrf.mxu1 }
 0x316   : > { %v655_v9 = vmul.f32 0.35355338, %v651_v7 }
 0x317   : > { %v1409_v10 = vpop.f32.mrf.mxu1 }
 0x318   : > { %v659_v11 = vadd.f32 %v658_v8, %v655_v9 }
 0x31a   : > { %v660_v12 = vsel %vm405_vm5, %v659_v11, -inf }
 0x31b   : > { %661 = vmax.xlane.f32.xlu0 %v660_v12 }
 0x3a4   : > { %v662_v2 = vpop.xlane.xlu0 %661 }
 0x3a5   : > { %v663_v3 = vsub.f32 %v659_v11, %v662_v2 }
 0x3a7   : > { %v664_v14 = vmul.f32 1.442695, %v663_v3  ;;  %v1324_v3 = vld [vmem:[%s2240_s6 + $0x6] ss:$0 sm:$0xff] }
 0x3a9   : > { %1550 = vpow2.f32 %v664_v14 }
 0x3b6   : > { %v1551_v16 = vpop.eup %1550 }
 0x3b7   : > { %1419 = vmatmul.mubr.msk.f32.vlgmr.msra.gmra.mxu1 %vm405_vm5, %v1551_v16 }
 0x3b8   : > { %1440 = vmatprep.mubr.msk.f32.mxu1 %vm1776_vm0, %v1775_v1  ;;  %1433 = vmatpush3.msra.mxu1 %v834_v15 }
 0x3b9   : > { %1434 = vmatprep.subr.mxu1 %v1775_v1 }
 0x3ba   : > { %1435 = vmatpush3.msra.mxu1 %v833_v17 }
 0x3bb   : > { %1436 = vmatprep.subr.mxu1 %v1775_v1 }
 0x3bc   : > { %1437 = vmatpush3.msra.mxu1 %v832_v18 }
 0x3bd   : > { %1438 = vmatprep.subr.mxu1 %v1775_v1 }
 0x3be   : > { %1439 = vmatpush3.msra.mxu1 %v831_v24 }
 0x3bf   : > { %1454 = vmatprep.subr.mxu1 %v1775_v1 }
 0x477   : > { %v735_v19 = vpop.f32.mrf.mxu1 }
 0x478   : > { %v739_v20 = vmax.f32 %v735_v19, 1e-30 }
 0x479   : > { %v1420_v21 = vpop.f32.mrf.mxu1 }
 0x47a   : > { %1552 = vrcp.f32 %v739_v20 }
 0x487   : > { %v1553_v22 = vpop.eup %1552 }
 0x488   : > { %v741_v23 = vmul.f32 %v1553_v22, %v1551_v16 }
 0x48a   : > { %1430 = vmatmul.mubr.msk.f32.vlgmr.msra.gmra.mxu0 %vm405_vm5, %v741_v23 }
 0x48b   : > { %1451 = vmatprep.mubr.msk.f32.mxu0 %vm1776_vm0, %v1775_v1  ;;  %1444 = vmatpush3.msra.mxu0 %v839_v39 }
 0x48c   : > { %1445 = vmatprep.subr.mxu0 %v1775_v1 }
 0x48d   : > { %1446 = vmatpush3.msra.mxu0 %v838_v40 }
 0x48e   : > { %1447 = vmatprep.subr.mxu0 %v1775_v1 }
 0x48f   : > { %1448 = vmatpush3.msra.mxu0 %v837_v41 }
 0x490   : > { %1449 = vmatprep.subr.mxu0 %v1775_v1 }
 0x54a   : > { %v827_v25 = vpop.f32.mrf.mxu0 }
 0x54b   : > { %1441 = vmatmul.mubr.msk.f32.vlgmr.msra.gmra.mxu1 %vm405_vm5, %v827_v25 }
 0x54c   : > { %v1431_v26 = vpop.f32.mrf.mxu0  ;;  %1462 = vmatprep.mubr.msk.f32.mxu1 %vm1776_vm0, %v1775_v1  ;;  %1455 = vmatpush3.msra.mxu1 %v844_v42 }
 0x54d   : > { %1456 = vmatprep.subr.mxu1 %v1775_v1 }
 0x54e   : > { %1457 = vmatpush3.msra.mxu1 %v843_v52 }
 0x54f   : > { %1458 = vmatprep.subr.mxu1 %v1775_v1 }
 0x550   : > { %1459 = vmatpush3.msra.mxu1 %v842_v53 }
 0x551   : > { %1460 = vmatprep.subr.mxu1 %v1775_v1 }
 0x552   : > { %1461 = vmatpush3.msra.mxu1 %v841_v54 }
 0x60b   : > { %v925_v28 = vpop.f32.mrf.mxu1 }
 0x60c   : > { %v926_v29 = vadd.f32 %v1315_v27, %v925_v28 }
 0x60d   : > { %v1442_v30 = vpop.f32.mrf.mxu1 }
 0x60e   : > { %v929_v31 = vadd.f32 %v926_v29, %v2100_v35  ;;  %v836_v35 = vld [vmem:[#allocation10 + $0x20] sm:$0xff] }
 0x60f   : > { %1450 = vmatpush3.msra.mxu0 %v836_v35 }
 0x610   : > { %v930_v32 = vsel %vm405_vm5, %v929_v31, 0.0 }
 0x611   : > { %931 = vadd.xlane.f32.xlu0 %v930_v32 }
 0x69a   : > { %v932_v33 = vpop.xlane.xlu0 %931 }
 0x69b   : > { %v934_v34 = vmul.f32 0.03125, %v932_v33 }
 0x69d   : > { %v935_v36 = vsub.f32 %v929_v31, %v934_v34 }
 0x69f   : > { %v936_v37 = vmul.f32 %v935_v36, %v935_v36 }
 0x6a1   : > { %v937_v38 = vsel %vm405_vm5, %v936_v37, 0.0 }
 0x6a2   : > { %938 = vadd.xlane.f32.xlu1 %v937_v38 }
 0x72b   : > { %v939_v43 = vpop.xlane.xlu1 %938 }
 0x72c   : > { %v940_v44 = vmul.f32 0.03125, %v939_v43 }
 0x72e   : > { %v941_v45 = vadd.f32 1e-05, %v940_v44 }
 0x730   : > { %1554 = vrsqrt.f32 %v941_v45 }
 0x73d   : > { %v1555_v46 = vpop.eup %1554 }
 0x73e   : > { %v943_v48 = vmul.f32 %v1555_v46, %v935_v36 }
 0x740   : > { %v948_v50 = vmul.f32 %v1317_v47, %v943_v48 }
 0x742   : > { %v953_v51 = vadd.f32 %v1318_v49, %v948_v50 }
 0x744   : > { %1452 = vmatmul.mubr.msk.f32.vlgmr.msra.gmra.mxu0 %vm405_vm5, %v953_v51 }
 0x804   : > { %v1027_v56 = vpop.f32.mrf.mxu0 }
 0x805   : > { %v1028_v57 = vadd.f32 %v1319_v55, %v1027_v56 }
 0x806   : > { %v1453_v58 = vpop.f32.mrf.mxu0 }
 0x807   : > { %v1031_v59 = vmax.f32 %v1028_v57, 0.0 }
 0x809   : > { %1463 = vmatmul.mubr.msk.f32.vlgmr.msra.gmra.mxu1 %vm405_vm5, %v1031_v59 }
 0x8c9   : > { %v1105_v61 = vpop.f32.mrf.mxu1 }
 0x8ca   : > { %v1106_v62 = vadd.f32 %v1321_v60, %v1105_v61 }
 0x8cb   : > { %v1464_v63 = vpop.f32.mrf.mxu1 }
 0x8cc   : > { %v1109_v1 = vadd.f32 %v1106_v62, %v953_v51 }
 0x8ce   : > { %v1110_v0 = vsel %vm405_vm5, %v1109_v1, 0.0 }
 0x8cf   : > { %1111 = vadd.xlane.f32.xlu0 %v1110_v0 }
 0x958   : > { %v1112_v4 = vpop.xlane.xlu0 %1111 }
 0x959   : > { %v1113_v5 = vmul.f32 0.03125, %v1112_v4 }
 0x95b   : > { %v1114_v6 = vsub.f32 %v1109_v1, %v1113_v5 }
 0x95d   : > { %v1115_v7 = vmul.f32 %v1114_v6, %v1114_v6 }
 0x95f   : > { %v1116_v8 = vsel %vm405_vm5, %v1115_v7, 0.0 }
 0x960   : > { %1117 = vadd.xlane.f32.xlu0 %v1116_v8 }
 0x9e9   : > { %v1118_v9 = vpop.xlane.xlu0 %1117 }
 0x9ea   : > { %v1119_v10 = vmul.f32 0.03125, %v1118_v9 }
 0x9ec   : > { %v1120_v11 = vadd.f32 1e-05, %v1119_v10 }
 0x9ee   : > { %1556 = vrsqrt.f32 %v1120_v11 }
 0x9fb   : > { %v1557_v12 = vpop.eup %1556 }
 0x9fc   : > { %v1122_v2 = vmul.f32 %v1557_v12, %v1114_v6 }
 0x9fe   : > { %v1127_v14 = vmul.f32 %v1323_v13, %v1122_v2 }
 0xa00   : > { %v1132_v16 = vadd.f32 %v1324_v3, %v1127_v14 }
 0xa02   : > { %1133 = vst.msk [vmem:[%s393_s18] sm:$0xff] %vm405_vm5, %v1132_v16 }
 0xa03   : > { %1707 = shalt.err (!%p1704_p11)
}
 0xa04   : > { %s1708_s3 = scalar_lea.hbm %s1146_s19, 128  ;;  %s1712_s16 = scalar_lea.hbm %s2241_s7, 256 }
 0xa05   : > { %p1709_p13 = scmp.ne.s32.totalorder %s1146_s19, %s1708_s3  ;;  %p1713_p10 = scmp.lt.s32.totalorder %s1146_s19, %s2241_s7 }
 0xa06   : > { %p1714_p9 = scmp.lt.s32.totalorder %s1712_s16, %s1708_s3 }
 0xa07   : > { %p1710_p1 = pnand %p1709_p13, %p2290_p0 }
 0xa08   : > { %p1715_p12 = por %p1714_p9, %p1713_p10 }
 0xa09   : > { %p1711_p6 = pneg %p1710_p1 }
 0xa0b   : > { %p1716_p7 = pnand %p1715_p12, %p1711_p6 }
 0xa0d   : > { %1719 = shalt.err (!%p1716_p7)
}
 0xa0e   : > { %1479 = dma.vmem_to_hbm [thread:$0]  (%p2290_p0), %s1149_s24, 128, %s1146_s19, %s1135_s15  }
 0xa0f PF: > { %s2291_s21 = sld [smem:[#allocation16_spill]] }
 0xa10   : > { %s2292_s9 = sld [smem:[#allocation18_spill]] }
 0xa11   : > { %s2293_s23 = sld [smem:[#allocation17_spill]] }
 0xa15   : > { %s1160_s11 = sand.u32 1, %s2291_s21  }
 0xa16   : > { %p2294_p3 = scmp.ne.s32.totalorder %s2292_s9, 0  ;;  %s1161_s8 = scalar_lea.sflag [#allocation4], %s1160_s11 }
 0xa17   : > { %p2295_p5 = scmp.ge.s32.totalorder %s2293_s23, 2 }
 0xa19   : > { %p1499_p2 = pnand %p2295_p5, %p2294_p3 }
 0xa1b   : > { %p1500_p4 = pneg %p1499_p2 }
 0xa1d   : > { %1749 = dma.done.wait (%p1500_p4), %s1161_s8, 128  }
 0xa1e   : > { %1751 = vsyncadd (%p1500_p4), %s1161_s8, 4294967168  ;;  %s2296_s27 = sld [smem:[#allocation19_spill]]  ;;  %s2298_s24 = smov %s1758_s25 }
 0xa1f   : > { %s2297_s30 = sld [smem:[#allocation20_spill]]  ;;  %s2299_s25 = smov %s1762_s26 }
 0xa24   : > { %p24_p8 = scmp.ge.s32.totalorder %s2296_s27, 4  }
 0xa25   : > { %s2300_s26 = smov %s2297_s30 }
 0xa26   :  { %26 = sbr.rel (!%p24_p8) target bundleno = 11 (0xb), region = 127 }
 0xa2b   :  { %1166 = vsyncpa [#allocation3], 1 }
 0xa2c   :  { %1168 = vsyncpa [#allocation3 + $0x1], 1 }
 0xa2d   :  { %1169 = vsyncpa [#allocation6], 1 }
 0xa2e   :  { %1171 = vsyncpa [#allocation6 + $0x1], 1 }
 0xa2f   :  { %1172 = vsyncpa [#allocation9], 1 }
 0xa30   :  { %1173 = vsyncpa [#allocation4], 1 }
 0xa31   :  { %1175 = vsyncpa [#allocation4 + $0x1], 1 }

</bundles_post_ra>
